<compile_context>
chip_gen: v7x
topology: tpu7x:2x2x1
jax: 0.10.0
libtpu: 0.0.40
codegen_flags: <defaults>
</compile_context>

<pallas_src>
import functools

import jax
import jax.numpy as jnp
from jax.experimental import pallas as pl
from jax.experimental.pallas import tpu as pltpu


def _round_up(x, m):
    return ((x + m - 1) // m) * m


# ----------------------------------------------------------------------------
# Pallas kernel: tiled (A_hat @ XW) with fused bias + PReLU epilogue
# ----------------------------------------------------------------------------
def _aggregate_kernel(a_ref, xw_ref, b_ref, alpha_ref, o_ref, acc_ref):
    k = pl.program_id(2)

    @pl.when(k == 0)
    def _():
        acc_ref[...] = jnp.zeros_like(acc_ref)

    # MXU: bf16 x bf16 -> f32 accumulate.
    acc_ref[...] += jnp.dot(
        a_ref[...], xw_ref[...], preferred_element_type=jnp.float32
    )

    # Epilogue only on the last K step: bias add + per-channel PReLU, then one
    # lane-dense bf16 store of the output tile (next layer consumes bf16).
    @pl.when(k == pl.num_programs(2) - 1)
    def _():
        z = acc_ref[...] + b_ref[...]
        o_ref[...] = jnp.where(z > 0.0, z, alpha_ref[...] * z).astype(o_ref.dtype)


def gcn_aggregate_prelu(a_hat_p, xw_p, b_p, alpha_p, *, tm, tn, tk):
    """bf16( PReLU(A_hat @ XW + b) ); all operands pre-padded to tile multiples.

    a_hat_p : (Np, Np) bf16   symmetric-normalized adjacency (zero padded)
    xw_p    : (Np, Fp) bf16   X @ W (zero padded)
    b_p     : (1,  Fp) f32    bias row
    alpha_p : (1,  Fp) f32    PReLU per-channel slope
    returns : (Np, Fp) bf16
    """
    n_pad = a_hat_p.shape[0]
    f_pad = xw_p.shape[1]
    grid = (n_pad // tm, f_pad // tn, n_pad // tk)

    # VMEM budget derived from the tile plan (double-buffered inputs/output,
    # f32 accumulator, bias/alpha rows) plus headroom; capped at 64 MiB (v7x).
    vmem_bytes = (
        2 * tm * tk * 2        # A_hat tiles (bf16, double-buffered)
        + 2 * tk * tn * 2      # XW tiles
        + 2 * tm * tn * 2      # output tiles (bf16)
        + tm * tn * 4          # f32 accumulator scratch
        + 4 * tn * 4 * 2       # bias + alpha rows
    )
    vmem_limit = min(vmem_bytes + (8 << 20), 64 << 20)

    return pl.pallas_call(
        _aggregate_kernel,
        out_shape=jax.ShapeDtypeStruct((n_pad, f_pad), jnp.bfloat16),
        grid_spec=pltpu.PrefetchScalarGridSpec(
            num_scalar_prefetch=0,
            grid=grid,
            in_specs=[
                pl.BlockSpec((tm, tk), lambda i, j, k: (i, k)),   # A_hat tile
                pl.BlockSpec((tk, tn), lambda i, j, k: (k, j)),   # XW tile
                pl.BlockSpec((1, tn), lambda i, j, k: (0, j)),    # bias
                pl.BlockSpec((1, tn), lambda i, j, k: (0, j)),    # alpha
            ],
            out_specs=pl.BlockSpec((tm, tn), lambda i, j, k: (i, j)),
            scratch_shapes=[pltpu.VMEM((tm, tn), jnp.float32)],
        ),
        compiler_params=pltpu.CompilerParams(
            dimension_semantics=("parallel", "parallel", "arbitrary"),
            vmem_limit_bytes=int(vmem_limit),
        ),
    )(a_hat_p, xw_p, b_p, alpha_p)


# ----------------------------------------------------------------------------
# Glue: dense symmetrically-normalized adjacency (GCNConv / gcn_norm)
# ----------------------------------------------------------------------------
def gcn_norm_dense(edge_index, edge_weight, num_nodes):
    """A_hat such that out = A_hat @ x matches GCNConv propagation.

    Follows torch_geometric's gcn_norm (add_remaining_self_loops semantics):
    existing self-loops keep their weight, nodes without one get weight 1.
    """
    src = edge_index[0]
    dst = edge_index[1]
    if edge_weight is None:
        edge_weight = jnp.ones(src.shape[0], dtype=jnp.float32)
    edge_weight = edge_weight.astype(jnp.float32)

    is_loop = src == dst
    w_off_diag = jnp.where(is_loop, 0.0, edge_weight)
    a = jnp.zeros((num_nodes, num_nodes), jnp.float32)
    a = a.at[dst, src].add(w_off_diag)

    loop_w = jnp.ones((num_nodes,), jnp.float32)
    loop_dst = jnp.where(is_loop, dst, num_nodes)  # out-of-range => dropped
    loop_w = loop_w.at[loop_dst].set(
        jnp.where(is_loop, edge_weight, 1.0), mode="drop"
    )
    a = a + jnp.diag(loop_w)

    deg = a.sum(axis=1)
    dinv = jnp.where(deg > 0, jax.lax.rsqrt(deg), 0.0)
    return dinv[:, None] * a * dinv[None, :]


# ----------------------------------------------------------------------------
# GConv parameters (deterministic synthetic init, matching module defaults)
# ----------------------------------------------------------------------------
def init_gconv_params(key, input_dim, hidden_dim, num_layers):
    params = []
    for i in range(num_layers):
        f_in = input_dim if i == 0 else hidden_dim
        key, wk = jax.random.split(key)
        limit = jnp.sqrt(6.0 / (f_in + hidden_dim))  # glorot-style
        w = jax.random.uniform(wk, (f_in, hidden_dim), jnp.float32, -limit, limit)
        b = jnp.zeros((hidden_dim,), jnp.float32)
        params.append((w, b))
    # PReLU per-channel alpha (PyTorch default 0.25), shared across layers as
    # in the reference module (self.activation is reused).
    alpha = jnp.full((hidden_dim,), 0.25, jnp.float32)
    return params, alpha


# ----------------------------------------------------------------------------
# Tile plan
# ----------------------------------------------------------------------------
def _tile_plan(n, hidden_dim):
    f_pad = _round_up(hidden_dim, 128)
    tn = min(f_pad, 512)                 # collapse j axis when F fits one block
    if n <= 1024:
        tm = tk = max(256, _round_up(n, 256))
    else:
        tm = tk = 1024                   # big tiles amortize per-step overhead;
                                         # keeps >=2 row blocks for megacore
    n_pad = _round_up(n, tm)
    return tm, tn, tk, n_pad, f_pad


# ----------------------------------------------------------------------------
# Forward pass
# ----------------------------------------------------------------------------
@functools.partial(jax.jit, static_argnames=("num_nodes",))
def gconv_forward(params, alpha, x, edge_index, edge_weight, num_nodes):
    hidden_dim = params[0][0].shape[1]
    input_dim = params[0][0].shape[0]
    n = num_nodes

    tm, tn, tk, n_pad, f_pad = _tile_plan(n, hidden_dim)

    a_hat = gcn_norm_dense(edge_index, edge_weight, n)
    a_hat_p = jnp.pad(a_hat, ((0, n_pad - n), (0, n_pad - n))).astype(jnp.bfloat16)
    alpha_p = jnp.pad(alpha, (0, f_pad - hidden_dim)).reshape(1, f_pad)
    alpha_p = alpha_p.astype(jnp.float32)

    # Activations stay in the padded (n_pad, f*_pad) bf16 layout across layers;
    # only the final output is sliced / cast back.
    fin_pad = _round_up(input_dim, 128)
    z_p = jnp.pad(
        x.astype(jnp.float32), ((0, n_pad - n), (0, fin_pad - input_dim))
    ).astype(jnp.bfloat16)

    for (w, b) in params:
        f_in = w.shape[0]
        fi_pad = _round_up(f_in, 128)
        w_p = jnp.pad(
            w, ((0, fi_pad - f_in), (0, f_pad - hidden_dim))
        ).astype(jnp.bfloat16)
        b_p = jnp.pad(b, (0, f_pad - hidden_dim)).reshape(1, f_pad)
        b_p = b_p.astype(jnp.float32)

        # Tiny per-layer feature transform kept in plain XLA.
        xw_p = jnp.dot(
            z_p, w_p, preferred_element_type=jnp.float32
        ).astype(jnp.bfloat16)

        z_p = gcn_aggregate_prelu(
            a_hat_p, xw_p, b_p, alpha_p, tm=tm, tn=tn, tk=tk
        )

    return z_p[:n, :hidden_dim].astype(jnp.float32)


# ----------------------------------------------------------------------------
# Pure-JAX reference (mirrors the bf16 feed of the MXU, f32 accumulation)
# ----------------------------------------------------------------------------
def gconv_reference(params, alpha, x, edge_index, edge_weight, num_nodes):
    a16 = gcn_norm_dense(edge_index, edge_weight, num_nodes).astype(jnp.bfloat16)
    z16 = x.astype(jnp.float32).astype(jnp.bfloat16)
    for (w, b) in params:
        xw16 = jnp.dot(
            z16, w.astype(jnp.bfloat16), preferred_element_type=jnp.float32
        ).astype(jnp.bfloat16)
        h = jnp.dot(a16, xw16, preferred_element_type=jnp.float32) + b
        z = jnp.where(h > 0, h, alpha * h)
        z16 = z.astype(jnp.bfloat16)
    return z16.astype(jnp.float32)


if __name__ == "__main__":
    key = jax.random.PRNGKey(0)

    num_nodes = 8
    input_dim = 16
    hidden_dim = 32
    num_layers = 2
    num_edges = 16

    k_x, k_e, k_p = jax.random.split(key, 3)
    x = jax.random.normal(k_x, (num_nodes, input_dim), jnp.float32)
    edge_index = jax.random.randint(
        k_e, (2, num_edges), 0, num_nodes, dtype=jnp.int32
    )
    edge_weight = None  # default: all-ones edge weights

    params, alpha = init_gconv_params(k_p, input_dim, hidden_dim, num_layers)

    out = gconv_forward(params, alpha, x, edge_index, edge_weight, num_nodes)
    out = jax.block_until_ready(out)

    ref = gconv_reference(params, alpha, x, edge_index, edge_weight, num_nodes)
    assert out.shape == (num_nodes, hidden_dim)
    max_err = float(jnp.max(jnp.abs(out - ref)))
    assert jnp.allclose(out, ref, atol=2e-2, rtol=2e-2), max_err

    print("KERNEL_OK")
</pallas_src>

<mosaic_0001>
module attributes {stable_mosaic.version = 11 : i64} {
  func.func private @main(%arg0: i32) attributes {dimension_semantics = [#tpu.dimension_semantics<core_parallel>], iteration_bounds = array<i64: 2>, tpu.core_type = #tpu.core_type<sc_scalar_subcore>, window_params = []} {
    return
  }
}

module attributes {stable_mosaic.version = 11 : i64} {
  func.func private @main(%arg0: i32) attributes {dimension_semantics = [#tpu.dimension_semantics<core_parallel>], iteration_bounds = array<i64: 2>, tpu.core_type = #tpu.core_type<sc_scalar_subcore>, window_params = []} {
    return
  }
}

module attributes {stable_mosaic.version = 11 : i64} {
  func.func @_aggregate_kernel(%arg0: i32, %arg1: i32, %arg2: i32, %arg3: memref<256x256xbf16, #tpu.memory_space<vmem>>, %arg4: memref<256x128xbf16, #tpu.memory_space<vmem>>, %arg5: memref<1x128xf32, #tpu.memory_space<vmem>>, %arg6: memref<1x128xf32, #tpu.memory_space<vmem>>, %arg7: memref<256x128xbf16, #tpu.memory_space<vmem>>, %arg8: memref<256x128xf32, #tpu.memory_space<vmem>>) attributes {dimension_semantics = [#tpu.dimension_semantics<parallel>, #tpu.dimension_semantics<parallel>, #tpu.dimension_semantics<arbitrary>], iteration_bounds = array<i64: 1, 1, 1>, scalar_prefetch = 0 : i64, scratch_operands = 1 : i64, tpu.core_type = #tpu.core_type<tc>, window_params = [{transform_indices = @transform_0, window_bounds = array<i64: 256, 256>}, {transform_indices = @transform_1, window_bounds = array<i64: 256, 128>}, {transform_indices = @transform_2, window_bounds = array<i64: 1, 128>}, {transform_indices = @transform_3, window_bounds = array<i64: 1, 128>}, {transform_indices = @transform_4, window_bounds = array<i64: 256, 128>}]} {
    %c0_i32 = arith.constant 0 : i32
    %0 = arith.cmpi eq, %arg2, %c0_i32 : i32
    %1 = arith.extui %0 : i1 to i32
    %c0_i32_0 = arith.constant 0 : i32
    %2 = arith.cmpi ne, %1, %c0_i32_0 : i32
    scf.if %2 {
      %cst_10 = arith.constant 0.000000e+00 : f32
      %12 = vector.broadcast %cst_10 : f32 to vector<256x128xf32>
      %c0_11 = arith.constant 0 : index
      %c0_12 = arith.constant 0 : index
      %13 = vector.load %arg8[%c0_11, %c0_12] : memref<256x128xf32, #tpu.memory_space<vmem>>, vector<256x128xf32>
      tpu.vector_store %arg8[%c0_11, %c0_12], %12 {strides = array<i32>} : memref<256x128xf32, #tpu.memory_space<vmem>>, vector<256x128xf32>,
    } else {
    }
    %c0 = arith.constant 0 : index
    %c0_1 = arith.constant 0 : index
    %3 = vector.load %arg8[%c0, %c0_1] : memref<256x128xf32, #tpu.memory_space<vmem>>, vector<256x128xf32>
    %c0_2 = arith.constant 0 : index
    %c0_3 = arith.constant 0 : index
    %4 = vector.load %arg3[%c0_2, %c0_3] : memref<256x256xbf16, #tpu.memory_space<vmem>>, vector<256x256xbf16>
    %c0_4 = arith.constant 0 : index
    %c0_5 = arith.constant 0 : index
    %5 = vector.load %arg4[%c0_4, %c0_5] : memref<256x128xbf16, #tpu.memory_space<vmem>>, vector<256x128xbf16>
    %cst = arith.constant dense<0.000000e+00> : vector<256x128xf32>
    %6 = tpu.matmul %4, %5, %cst {dimension_numbers = #tpu.dot_dimension_numbers<[1], [0], [0], [1], [0, 0, 1, 1], [], []>} : vector<256x256xbf16>, vector<256x128xbf16>, vector<256x128xf32> -> vector<256x128xf32>
    %7 = arith.addf %3, %6 : vector<256x128xf32>
    %c0_6 = arith.constant 0 : index
    %c0_7 = arith.constant 0 : index
    %8 = vector.load %arg8[%c0_6, %c0_7] : memref<256x128xf32, #tpu.memory_space<vmem>>, vector<256x128xf32>
    tpu.vector_store %arg8[%c0_6, %c0_7], %7 {strides = array<i32>} : memref<256x128xf32, #tpu.memory_space<vmem>>, vector<256x128xf32>,
    %c0_i32_8 = arith.constant 0 : i32
    %9 = arith.cmpi eq, %arg2, %c0_i32_8 : i32
    %10 = arith.extui %9 : i1 to i32
    %c0_i32_9 = arith.constant 0 : i32
    %11 = arith.cmpi ne, %10, %c0_i32_9 : i32
    scf.if %11 {
      %c0_10 = arith.constant 0 : index
      %c0_11 = arith.constant 0 : index
      %12 = vector.load %arg8[%c0_10, %c0_11] : memref<256x128xf32, #tpu.memory_space<vmem>>, vector<256x128xf32>
      %c0_12 = arith.constant 0 : index
      %c0_13 = arith.constant 0 : index
      %13 = vector.load %arg5[%c0_12, %c0_13] : memref<1x128xf32, #tpu.memory_space<vmem>>, vector<1x128xf32>
      %14 = vector.broadcast %13 : vector<1x128xf32> to vector<256x128xf32>
      %15 = arith.addf %12, %14 : vector<256x128xf32>
      %cst_14 = arith.constant 0.000000e+00 : f32
      %16 = vector.broadcast %cst_14 : f32 to vector<256x128xf32>
      %17 = arith.cmpf ogt, %15, %16 : vector<256x128xf32>
      %c0_15 = arith.constant 0 : index
      %c0_16 = arith.constant 0 : index
      %18 = vector.load %arg6[%c0_15, %c0_16] : memref<1x128xf32, #tpu.memory_space<vmem>>, vector<1x128xf32>
      %19 = vector.broadcast %18 : vector<1x128xf32> to vector<256x128xf32>
      %20 = arith.mulf %19, %15 : vector<256x128xf32>
      %21 = arith.select %17, %15, %20 : vector<256x128xi1>, vector<256x128xf32>
      %22 = arith.truncf %21 : vector<256x128xf32> to vector<256x128xbf16>
      %c0_17 = arith.constant 0 : index
      %c0_18 = arith.constant 0 : index
      %23 = vector.load %arg7[%c0_17, %c0_18] : memref<256x128xbf16, #tpu.memory_space<vmem>>, vector<256x128xbf16>
      tpu.vector_store %arg7[%c0_17, %c0_18], %22 {strides = array<i32>} : memref<256x128xbf16, #tpu.memory_space<vmem>>, vector<256x128xbf16>,
    } else {
    }
    return
  }
  func.func @transform_0(%arg0: i32, %arg1: i32, %arg2: i32) -> (i32, i32) {
    %c0_i32 = arith.constant 0 : i32
    return %arg0, %arg2 : i32, i32
  }
  func.func @transform_1(%arg0: i32, %arg1: i32, %arg2: i32) -> (i32, i32) {
    %c0_i32 = arith.constant 0 : i32
    return %arg2, %arg1 : i32, i32
  }
  func.func @transform_2(%arg0: i32, %arg1: i32, %arg2: i32) -> (i32, i32) {
    %c0_i32 = arith.constant 0 : i32
    %c0_i32_0 = arith.constant 0 : i32
    return %c0_i32, %arg1 : i32, i32
  }
  func.func @transform_3(%arg0: i32, %arg1: i32, %arg2: i32) -> (i32, i32) {
    %c0_i32 = arith.constant 0 : i32
    %c0_i32_0 = arith.constant 0 : i32
    return %c0_i32, %arg1 : i32, i32
  }
  func.func @transform_4(%arg0: i32, %arg1: i32, %arg2: i32) -> (i32, i32) {
    %c0_i32 = arith.constant 0 : i32
    return %arg0, %arg1 : i32, i32
  }
}

module attributes {stable_mosaic.version = 11 : i64} {
  func.func @_aggregate_kernel(%arg0: i32, %arg1: i32, %arg2: i32, %arg3: memref<256x256xbf16, #tpu.memory_space<vmem>>, %arg4: memref<256x128xbf16, #tpu.memory_space<vmem>>, %arg5: memref<1x128xf32, #tpu.memory_space<vmem>>, %arg6: memref<1x128xf32, #tpu.memory_space<vmem>>, %arg7: memref<256x128xbf16, #tpu.memory_space<vmem>>, %arg8: memref<256x128xf32, #tpu.memory_space<vmem>>) attributes {dimension_semantics = [#tpu.dimension_semantics<parallel>, #tpu.dimension_semantics<parallel>, #tpu.dimension_semantics<arbitrary>], iteration_bounds = array<i64: 1, 1, 1>, scalar_prefetch = 0 : i64, scratch_operands = 1 : i64, tpu.core_type = #tpu.core_type<tc>, window_params = [{transform_indices = @transform_0, window_bounds = array<i64: 256, 256>}, {transform_indices = @transform_1, window_bounds = array<i64: 256, 128>}, {transform_indices = @transform_2, window_bounds = array<i64: 1, 128>}, {transform_indices = @transform_3, window_bounds = array<i64: 1, 128>}, {transform_indices = @transform_4, window_bounds = array<i64: 256, 128>}]} {
    %c0_i32 = arith.constant 0 : i32
    %0 = arith.cmpi eq, %arg2, %c0_i32 : i32
    %1 = arith.extui %0 : i1 to i32
    %c0_i32_0 = arith.constant 0 : i32
    %2 = arith.cmpi ne, %1, %c0_i32_0 : i32
    scf.if %2 {
      %cst_10 = arith.constant 0.000000e+00 : f32
      %12 = vector.broadcast %cst_10 : f32 to vector<256x128xf32>
      %c0_11 = arith.constant 0 : index
      %c0_12 = arith.constant 0 : index
      %13 = vector.load %arg8[%c0_11, %c0_12] : memref<256x128xf32, #tpu.memory_space<vmem>>, vector<256x128xf32>
      tpu.vector_store %arg8[%c0_11, %c0_12], %12 {strides = array<i32>} : memref<256x128xf32, #tpu.memory_space<vmem>>, vector<256x128xf32>,
    } else {
    }
    %c0 = arith.constant 0 : index
    %c0_1 = arith.constant 0 : index
    %3 = vector.load %arg8[%c0, %c0_1] : memref<256x128xf32, #tpu.memory_space<vmem>>, vector<256x128xf32>
    %c0_2 = arith.constant 0 : index
    %c0_3 = arith.constant 0 : index
    %4 = vector.load %arg3[%c0_2, %c0_3] : memref<256x256xbf16, #tpu.memory_space<vmem>>, vector<256x256xbf16>
    %c0_4 = arith.constant 0 : index
    %c0_5 = arith.constant 0 : index
    %5 = vector.load %arg4[%c0_4, %c0_5] : memref<256x128xbf16, #tpu.memory_space<vmem>>, vector<256x128xbf16>
    %cst = arith.constant dense<0.000000e+00> : vector<256x128xf32>
    %6 = tpu.matmul %4, %5, %cst {dimension_numbers = #tpu.dot_dimension_numbers<[1], [0], [0], [1], [0, 0, 1, 1], [], []>} : vector<256x256xbf16>, vector<256x128xbf16>, vector<256x128xf32> -> vector<256x128xf32>
    %7 = arith.addf %3, %6 : vector<256x128xf32>
    %c0_6 = arith.constant 0 : index
    %c0_7 = arith.constant 0 : index
    %8 = vector.load %arg8[%c0_6, %c0_7] : memref<256x128xf32, #tpu.memory_space<vmem>>, vector<256x128xf32>
    tpu.vector_store %arg8[%c0_6, %c0_7], %7 {strides = array<i32>} : memref<256x128xf32, #tpu.memory_space<vmem>>, vector<256x128xf32>,
    %c0_i32_8 = arith.constant 0 : i32
    %9 = arith.cmpi eq, %arg2, %c0_i32_8 : i32
    %10 = arith.extui %9 : i1 to i32
    %c0_i32_9 = arith.constant 0 : i32
    %11 = arith.cmpi ne, %10, %c0_i32_9 : i32
    scf.if %11 {
      %c0_10 = arith.constant 0 : index
      %c0_11 = arith.constant 0 : index
      %12 = vector.load %arg8[%c0_10, %c0_11] : memref<256x128xf32, #tpu.memory_space<vmem>>, vector<256x128xf32>
      %c0_12 = arith.constant 0 : index
      %c0_13 = arith.constant 0 : index
      %13 = vector.load %arg5[%c0_12, %c0_13] : memref<1x128xf32, #tpu.memory_space<vmem>>, vector<1x128xf32>
      %14 = vector.broadcast %13 : vector<1x128xf32> to vector<256x128xf32>
      %15 = arith.addf %12, %14 : vector<256x128xf32>
      %cst_14 = arith.constant 0.000000e+00 : f32
      %16 = vector.broadcast %cst_14 : f32 to vector<256x128xf32>
      %17 = arith.cmpf ogt, %15, %16 : vector<256x128xf32>
      %c0_15 = arith.constant 0 : index
      %c0_16 = arith.constant 0 : index
      %18 = vector.load %arg6[%c0_15, %c0_16] : memref<1x128xf32, #tpu.memory_space<vmem>>, vector<1x128xf32>
      %19 = vector.broadcast %18 : vector<1x128xf32> to vector<256x128xf32>
      %20 = arith.mulf %19, %15 : vector<256x128xf32>
      %21 = arith.select %17, %15, %20 : vector<256x128xi1>, vector<256x128xf32>
      %22 = arith.truncf %21 : vector<256x128xf32> to vector<256x128xbf16>
      %c0_17 = arith.constant 0 : index
      %c0_18 = arith.constant 0 : index
      %23 = vector.load %arg7[%c0_17, %c0_18] : memref<256x128xbf16, #tpu.memory_space<vmem>>, vector<256x128xbf16>
      tpu.vector_store %arg7[%c0_17, %c0_18], %22 {strides = array<i32>} : memref<256x128xbf16, #tpu.memory_space<vmem>>, vector<256x128xbf16>,
    } else {
    }
    return
  }
  func.func @transform_0(%arg0: i32, %arg1: i32, %arg2: i32) -> (i32, i32) {
    %c0_i32 = arith.constant 0 : i32
    return %arg0, %arg2 : i32, i32
  }
  func.func @transform_1(%arg0: i32, %arg1: i32, %arg2: i32) -> (i32, i32) {
    %c0_i32 = arith.constant 0 : i32
    return %arg2, %arg1 : i32, i32
  }
  func.func @transform_2(%arg0: i32, %arg1: i32, %arg2: i32) -> (i32, i32) {
    %c0_i32 = arith.constant 0 : i32
    %c0_i32_0 = arith.constant 0 : i32
    return %c0_i32, %arg1 : i32, i32
  }
  func.func @transform_3(%arg0: i32, %arg1: i32, %arg2: i32) -> (i32, i32) {
    %c0_i32 = arith.constant 0 : i32
    %c0_i32_0 = arith.constant 0 : i32
    return %c0_i32, %arg1 : i32, i32
  }
  func.func @transform_4(%arg0: i32, %arg1: i32, %arg2: i32) -> (i32, i32) {
    %c0_i32 = arith.constant 0 : i32
    return %arg0, %arg1 : i32, i32
  }
}

</mosaic_0001>

<bundles_post_ra>
// kernel: gconv_forward.2
= control target key start
LH: loop header
LB: loop body
LE: loop exit
PB: predicated region body
PF: predicated region fallthrough
CT: control target
= control target key end

     0   :  { %s1377_s1 = inlined_call_operand.vmem [shape: bf16[256,128], index: 1, kind: input, shape index: {}]   ;;  %s1378_s0 = inlined_call_operand.vmem [shape: bf16[256,256], index: 0, kind: input, shape index: {}]   ;;  %s1379_s2 = inlined_call_operand.vmem [shape: f32[1,128], index: 2, kind: input, shape index: {}]   ;;  %s1380_s3 = inlined_call_operand.vmem [shape: f32[1,128], index: 3, kind: input, shape index: {}]   ;;  %s1381_s4 = inlined_call_operand.vmem [shape: bf16[256,128], index: 4, kind: output, shape index: {}]  }
   0x1   :  { %v1022_v0 = vld [vmem:[%s1377_s1 + $0x40] sm:$0xff]   ;;  %v1024_v2 = vld [vmem:[%s1377_s1 + $0x48] sm:$0xff]   ;;  %v1026_v4 = vld [vmem:[%s1377_s1 + $0x50] sm:$0xff]  }
   0x2   :  { %v1023_v1 = vld [vmem:[%s1377_s1] sm:$0xff]   ;;  %894 = vmatprep.subr.bf16.mxu0 %v1022_v0  ;;  %1006 = vmatprep.subr.bf16.mxu1 %v1022_v0  ;;  %v1025_v3 = vld [vmem:[%s1377_s1 + $0x8] sm:$0xff]   ;;  %v1027_v5 = vld [vmem:[%s1377_s1 + $0x10] sm:$0xff]  }
   0x3   :  { %895 = vmatpush3.bf16.msra.mxu0 %v1023_v1  ;;  %1014 = vmatpush3.bf16.msra.mxu1 %v1023_v1  ;;  %v1028_v6 = vld [vmem:[%s1377_s1 + $0x58] sm:$0xff]   ;;  %v1030_v8 = vld [vmem:[%s1377_s1 + $0x60] sm:$0xff]   ;;  %v1032_v10 = vld [vmem:[%s1377_s1 + $0x68] sm:$0xff]  }
   0x4   :  { %896 = vmatprep.subr.bf16.mxu0 %v1024_v2  ;;  %1007 = vmatprep.subr.bf16.mxu1 %v1024_v2  ;;  %v1029_v7 = vld [vmem:[%s1377_s1 + $0x18] sm:$0xff]   ;;  %v1031_v9 = vld [vmem:[%s1377_s1 + $0x20] sm:$0xff]   ;;  %v1033_v13 = vld [vmem:[%s1377_s1 + $0x28] sm:$0xff]  }
   0x5   :  { %v1040_v11 = vld [vmem:[%s1378_s0 + $0x4] ss:$8 sps:$4 sm:$0xff]   ;;  %v1034_v14 = vld [vmem:[%s1377_s1 + $0x70] sm:$0xff]   ;;  %v1036_v16 = vld [vmem:[%s1377_s1 + $0x78] sm:$0xff]  }
   0x6   :  { %v1043_v12 = vld [vmem:[%s1378_s0 + $0x84] ss:$8 sps:$4 sm:$0xff]   ;;  %438 = vmatprep.mubr.bf16.mxu0 %v1040_v11  ;;  %v1035_v15 = vld [vmem:[%s1377_s1 + $0x30] sm:$0xff]   ;;  %v1037_v17 = vld [vmem:[%s1377_s1 + $0x38] sm:$0xff]  }
   0x7   :  { %897 = vmatpush3.bf16.msra.mxu0 %v1025_v3  ;;  %1015 = vmatpush3.bf16.msra.mxu1 %v1025_v3  ;;  %v1038_v18 = vld [vmem:[%s1378_s0] ss:$8 sps:$4 sm:$0xff]   ;;  %v1044_v20 = vld [vmem:[%s1378_s0 + $0x14] ss:$8 sps:$4 sm:$0xff]   ;;  %v1048_v22 = vld [vmem:[%s1378_s0 + $0x10] ss:$8 sps:$4 sm:$0xff]  }
   0x8   :  { %898 = vmatprep.subr.bf16.mxu0 %v1026_v4  ;;  %1008 = vmatprep.subr.bf16.mxu1 %v1026_v4  ;;  %v1041_v19 = vld [vmem:[%s1378_s0 + $0x80] ss:$8 sps:$4 sm:$0xff]   ;;  %v1046_v21 = vld [vmem:[%s1378_s0 + $0x94] ss:$8 sps:$4 sm:$0xff]   ;;  %v1049_v23 = vld [vmem:[%s1378_s0 + $0x90] ss:$8 sps:$4 sm:$0xff]  }
   0x9   :  { %502 = vmatprep.mubr.bf16.mxu1 %v1043_v12  ;;  %v1050_v24 = vld [vmem:[%s1378_s0 + $0x24] ss:$8 sps:$4 sm:$0xff]   ;;  %v1054_v26 = vld [vmem:[%s1378_s0 + $0x20] ss:$8 sps:$4 sm:$0xff]   ;;  %v1056_v28 = vld [vmem:[%s1378_s0 + $0x34] ss:$8 sps:$4 sm:$0xff]  }
   0xa   :  { %v1052_v25 = vld [vmem:[%s1378_s0 + $0xa4] ss:$8 sps:$4 sm:$0xff]   ;;  %v1055_v27 = vld [vmem:[%s1378_s0 + $0xa0] ss:$8 sps:$4 sm:$0xff]   ;;  %v1058_v29 = vld [vmem:[%s1378_s0 + $0xb4] ss:$8 sps:$4 sm:$0xff]  }
   0xb   :  { %899 = vmatpush3.bf16.msra.mxu0 %v1027_v5  ;;  %1016 = vmatpush3.bf16.msra.mxu1 %v1027_v5  ;;  %v1060_v30 = vld [vmem:[%s1378_s0 + $0x30] ss:$8 sps:$4 sm:$0xff]   ;;  %v1062_v32 = vld [vmem:[%s1378_s0 + $0x44] ss:$8 sps:$4 sm:$0xff]   ;;  %v1066_v34 = vld [vmem:[%s1378_s0 + $0x40] ss:$8 sps:$4 sm:$0xff]  }
   0xc   :  { %900 = vmatprep.subr.bf16.mxu0 %v1028_v6  ;;  %1009 = vmatprep.subr.bf16.mxu1 %v1028_v6  ;;  %v1061_v31 = vld [vmem:[%s1378_s0 + $0xb0] ss:$8 sps:$4 sm:$0xff]   ;;  %v1064_v33 = vld [vmem:[%s1378_s0 + $0xc4] ss:$8 sps:$4 sm:$0xff]   ;;  %v1067_v35 = vld [vmem:[%s1378_s0 + $0xc0] ss:$8 sps:$4 sm:$0xff]  }
   0xd   :  { %v1068_v36 = vld [vmem:[%s1378_s0 + $0x54] ss:$8 sps:$4 sm:$0xff]   ;;  %v1072_v38 = vld [vmem:[%s1378_s0 + $0x50] ss:$8 sps:$4 sm:$0xff]   ;;  %v1074_v40 = vld [vmem:[%s1378_s0 + $0x64] ss:$8 sps:$4 sm:$0xff]  }
   0xe   :  { %v1070_v37 = vld [vmem:[%s1378_s0 + $0xd4] ss:$8 sps:$4 sm:$0xff]   ;;  %v1073_v39 = vld [vmem:[%s1378_s0 + $0xd0] ss:$8 sps:$4 sm:$0xff]   ;;  %v1076_v41 = vld [vmem:[%s1378_s0 + $0xe4] ss:$8 sps:$4 sm:$0xff]  }
   0xf   :  { %901 = vmatpush3.bf16.msra.mxu0 %v1029_v7  ;;  %1017 = vmatpush3.bf16.msra.mxu1 %v1029_v7  ;;  %v1078_v42 = vld [vmem:[%s1378_s0 + $0x60] ss:$8 sps:$4 sm:$0xff]   ;;  %v1080_v44 = vld [vmem:[%s1378_s0 + $0x74] ss:$8 sps:$4 sm:$0xff]   ;;  %v1084_v46 = vld [vmem:[%s1378_s0 + $0x70] ss:$8 sps:$4 sm:$0xff]  }
  0x10   :  { %902 = vmatprep.subr.bf16.mxu0 %v1030_v8  ;;  %1010 = vmatprep.subr.bf16.mxu1 %v1030_v8  ;;  %v1079_v43 = vld [vmem:[%s1378_s0 + $0xe0] ss:$8 sps:$4 sm:$0xff]   ;;  %v1082_v45 = vld [vmem:[%s1378_s0 + $0xf4] ss:$8 sps:$4 sm:$0xff]   ;;  %v1085_v47 = vld [vmem:[%s1378_s0 + $0xf0] ss:$8 sps:$4 sm:$0xff]  }
  0x11   :  { %v1258_v51 = vld [vmem:[%s1379_s2] ss:$0 sm:$0xff] }
  0x12   :  { %v1264_v60 = vld [vmem:[%s1380_s3] ss:$0 sm:$0xff] }
  0x13   :  { %903 = vmatpush3.bf16.msra.mxu0 %v1031_v9  ;;  %1018 = vmatpush3.bf16.msra.mxu1 %v1031_v9 }
  0x14   :  { %904 = vmatprep.subr.bf16.mxu0 %v1032_v10  ;;  %1011 = vmatprep.subr.bf16.mxu1 %v1032_v10 }
  0x17   :  { %905 = vmatpush3.bf16.msra.mxu0 %v1033_v13  ;;  %1019 = vmatpush3.bf16.msra.mxu1 %v1033_v13 }
  0x18   :  { %906 = vmatprep.subr.bf16.mxu0 %v1034_v14  ;;  %1012 = vmatprep.subr.bf16.mxu1 %v1034_v14 }
  0x1b   :  { %907 = vmatpush3.bf16.msra.mxu0 %v1035_v15  ;;  %1020 = vmatpush3.bf16.msra.mxu1 %v1035_v15 }
  0x1c   :  { %908 = vmatprep.subr.bf16.mxu0 %v1036_v16  ;;  %1013 = vmatprep.subr.bf16.mxu1 %v1036_v16 }
  0x1f   :  { %909 = vmatpush3.bf16.msra.mxu0 %v1037_v17  ;;  %1021 = vmatpush3.bf16.msra.mxu1 %v1037_v17 }
  0x22   :  { %439 = vmatmul.mubr.bf16.vlgmr.msra.gmra.mrb[0].mxu0 %v1038_v18  ;;  %503 = vmatmul.mubr.bf16.vlgmr.msra.gmra.mrb[0].mxu1 %v1041_v19 }
  0x23   :  { %446 = vmatprep.mubr.bf16.mxu0 %v1044_v20  ;;  %510 = vmatprep.mubr.bf16.mxu1 %v1046_v21 }
  0x2a   :  { %447 = vmatmul.mubr.bf16.gmra.mrb[4].mxu0 %v1048_v22  ;;  %511 = vmatmul.mubr.bf16.gmra.mrb[4].mxu1 %v1049_v23 }
  0x2b   :  { %454 = vmatprep.mubr.bf16.mxu0 %v1050_v24  ;;  %518 = vmatprep.mubr.bf16.mxu1 %v1052_v25 }
  0x32   :  { %455 = vmatmul.mubr.bf16.gmra.mrb[8].mxu0 %v1054_v26  ;;  %519 = vmatmul.mubr.bf16.gmra.mrb[8].mxu1 %v1055_v27 }
  0x33   :  { %462 = vmatprep.mubr.bf16.mxu0 %v1056_v28  ;;  %526 = vmatprep.mubr.bf16.mxu1 %v1058_v29 }
  0x3a   :  { %463 = vmatmul.mubr.bf16.gmra.mrb[12].mxu0 %v1060_v30  ;;  %527 = vmatmul.mubr.bf16.gmra.mrb[12].mxu1 %v1061_v31 }
  0x3b   :  { %470 = vmatprep.mubr.bf16.mxu0 %v1062_v32  ;;  %534 = vmatprep.mubr.bf16.mxu1 %v1064_v33 }
  0x42   :  { %471 = vmatmul.mubr.bf16.gmra.mrb[16].mxu0 %v1066_v34  ;;  %535 = vmatmul.mubr.bf16.gmra.mrb[16].mxu1 %v1067_v35 }
  0x43   :  { %478 = vmatprep.mubr.bf16.mxu0 %v1068_v36  ;;  %542 = vmatprep.mubr.bf16.mxu1 %v1070_v37 }
  0x4a   :  { %479 = vmatmul.mubr.bf16.gmra.mrb[20].mxu0 %v1072_v38  ;;  %543 = vmatmul.mubr.bf16.gmra.mrb[20].mxu1 %v1073_v39 }
  0x4b   :  { %486 = vmatprep.mubr.bf16.mxu0 %v1074_v40  ;;  %550 = vmatprep.mubr.bf16.mxu1 %v1076_v41 }
  0x52   :  { %487 = vmatmul.mubr.bf16.gmra.mrb[24].mxu0 %v1078_v42  ;;  %551 = vmatmul.mubr.bf16.gmra.mrb[24].mxu1 %v1079_v43 }
  0x53   :  { %494 = vmatprep.mubr.bf16.mxu0 %v1080_v44  ;;  %558 = vmatprep.mubr.bf16.mxu1 %v1082_v45 }
  0x5a   :  { %495 = vmatmul.mubr.bf16.gmra.mrb[28].mxu0 %v1084_v46  ;;  %559 = vmatmul.mubr.bf16.gmra.mrb[28].mxu1 %v1085_v47 }
  0xf5   :  { %v910_v48 = vpop.f32.mrb[0].mxu0  ;;  %v958_v49 = vpop.f32.mrb[0].mxu1 }
  0xf6   :  { %v911_v50 = vpop.f32.mrb[1].mxu0  ;;  %v959_v52 = vpop.f32.mrb[1].mxu1 }
  0xf7   :  { %v912_v53 = vadd.f32 %v911_v50, %v910_v48  ;;  %v960_v54 = vadd.f32 %v959_v52, %v958_v49  ;;  %v913_v55 = vpop.f32.mrb[2].mxu0  ;;  %v961_v56 = vpop.f32.mrb[2].mxu1 }
  0xf8   :  { %v914_v57 = vpop.f32.mrb[3].mxu0  ;;  %v962_v58 = vpop.f32.mrb[3].mxu1 }
  0xf9   :  { %v673_v59 = vadd.f32 %v912_v53, %v1258_v51  ;;  %v689_v61 = vadd.f32 %v960_v54, %v1258_v51  ;;  %v915_v62 = vadd.f32 %v914_v57, %v913_v55  ;;  %v963_v63 = vadd.f32 %v962_v58, %v961_v56 }
  0xfb   :  { %v744_v0 = vmul.f32 %v1264_v60, %v673_v59  ;;  %v760_v1 = vmul.f32 %v1264_v60, %v689_v61  ;;  %v674_v2 = vadd.f32 %v915_v62, %v1258_v51  ;;  %v690_v3 = vadd.f32 %v963_v63, %v1258_v51 }
  0xfc   :  { %vm705_vm0 = vcmp.gt.f32.partialorder %v673_v59, 0.0  ;;  %vm721_vm1 = vcmp.gt.f32.partialorder %v689_v61, 0.0 }
  0xfd   :  { %v916_v4 = vpop.f32.mrb[4].mxu0  ;;  %v964_v5 = vpop.f32.mrb[4].mxu1  ;;  %vm706_vm2 = vcmp.gt.f32.partialorder %v674_v2, 0.0  ;;  %v745_v6 = vmul.f32 %v1264_v60, %v674_v2  ;;  %vm722_vm3 = vcmp.gt.f32.partialorder %v690_v3, 0.0  ;;  %v761_v7 = vmul.f32 %v1264_v60, %v690_v3 }
  0xfe   :  { %v917_v8 = vpop.f32.mrb[5].mxu0  ;;  %v965_v9 = vpop.f32.mrb[5].mxu1  ;;  %v776_v14 = vsel %vm705_vm0, %v673_v59, %v744_v0  ;;  %v792_v15 = vsel %vm721_vm1, %v689_v61, %v760_v1 }
  0xff   :  { %v918_v10 = vadd.f32 %v917_v8, %v916_v4  ;;  %v966_v11 = vadd.f32 %v965_v9, %v964_v5  ;;  %v919_v12 = vpop.f32.mrb[6].mxu0  ;;  %v967_v13 = vpop.f32.mrb[6].mxu1  ;;  %v777_v16 = vsel %vm706_vm2, %v674_v2, %v745_v6  ;;  %v793_v17 = vsel %vm722_vm3, %v690_v3, %v761_v7 }
 0x100   :  { %v920_v18 = vpop.f32.mrb[7].mxu0  ;;  %v968_v19 = vpop.f32.mrb[7].mxu1  ;;  %v808_v20 = vpack.c.bf16 %v777_v16, %v776_v14  ;;  %v816_v21 = vpack.c.bf16 %v793_v17, %v792_v15 }
 0x101   :  { %v675_v22 = vadd.f32 %v918_v10, %v1258_v51  ;;  %v691_v23 = vadd.f32 %v966_v11, %v1258_v51  ;;  %v921_v24 = vadd.f32 %v920_v18, %v919_v12  ;;  %v969_v25 = vadd.f32 %v968_v19, %v967_v13 }
 0x102   :  { %824 = vst [vmem:[%s1381_s4] sm:$0xff] %v808_v20  ;;  %832 = vst [vmem:[%s1381_s4 + $0x40] sm:$0xff] %v816_v21 }
 0x103   :  { %v746_v26 = vmul.f32 %v1264_v60, %v675_v22  ;;  %v762_v27 = vmul.f32 %v1264_v60, %v691_v23  ;;  %v676_v28 = vadd.f32 %v921_v24, %v1258_v51  ;;  %v692_v29 = vadd.f32 %v969_v25, %v1258_v51 }
 0x104   :  { %vm707_vm4 = vcmp.gt.f32.partialorder %v675_v22, 0.0  ;;  %vm723_vm5 = vcmp.gt.f32.partialorder %v691_v23, 0.0 }
 0x105   :  { %v922_v30 = vpop.f32.mrb[8].mxu0  ;;  %v970_v31 = vpop.f32.mrb[8].mxu1  ;;  %vm708_vm6 = vcmp.gt.f32.partialorder %v676_v28, 0.0  ;;  %v747_v32 = vmul.f32 %v1264_v60, %v676_v28  ;;  %vm724_vm7 = vcmp.gt.f32.partialorder %v692_v29, 0.0  ;;  %v763_v33 = vmul.f32 %v1264_v60, %v692_v29 }
 0x106   :  { %v923_v34 = vpop.f32.mrb[9].mxu0  ;;  %v971_v35 = vpop.f32.mrb[9].mxu1  ;;  %v778_v40 = vsel %vm707_vm4, %v675_v22, %v746_v26  ;;  %v794_v41 = vsel %vm723_vm5, %v691_v23, %v762_v27 }
 0x107   :  { %v924_v36 = vadd.f32 %v923_v34, %v922_v30  ;;  %v972_v37 = vadd.f32 %v971_v35, %v970_v31  ;;  %v925_v38 = vpop.f32.mrb[10].mxu0  ;;  %v973_v39 = vpop.f32.mrb[10].mxu1  ;;  %v779_v42 = vsel %vm708_vm6, %v676_v28, %v747_v32  ;;  %v795_v43 = vsel %vm724_vm7, %v692_v29, %v763_v33 }
 0x108   :  { %v926_v44 = vpop.f32.mrb[11].mxu0  ;;  %v974_v45 = vpop.f32.mrb[11].mxu1  ;;  %v809_v46 = vpack.c.bf16 %v779_v42, %v778_v40  ;;  %v817_v47 = vpack.c.bf16 %v795_v43, %v794_v41 }
 0x109   :  { %v677_v48 = vadd.f32 %v924_v36, %v1258_v51  ;;  %v693_v49 = vadd.f32 %v972_v37, %v1258_v51  ;;  %v927_v50 = vadd.f32 %v926_v44, %v925_v38  ;;  %v975_v52 = vadd.f32 %v974_v45, %v973_v39 }
 0x10a   :  { %825 = vst [vmem:[%s1381_s4 + $0x8] sm:$0xff] %v809_v46  ;;  %833 = vst [vmem:[%s1381_s4 + $0x48] sm:$0xff] %v817_v47 }
 0x10b   :  { %v748_v53 = vmul.f32 %v1264_v60, %v677_v48  ;;  %v764_v54 = vmul.f32 %v1264_v60, %v693_v49  ;;  %v678_v55 = vadd.f32 %v927_v50, %v1258_v51  ;;  %v694_v56 = vadd.f32 %v975_v52, %v1258_v51 }
 0x10c   :  { %vm709_vm8 = vcmp.gt.f32.partialorder %v677_v48, 0.0  ;;  %vm725_vm9 = vcmp.gt.f32.partialorder %v693_v49, 0.0 }
 0x10d   :  { %v928_v57 = vpop.f32.mrb[12].mxu0  ;;  %v976_v58 = vpop.f32.mrb[12].mxu1  ;;  %vm710_vm10 = vcmp.gt.f32.partialorder %v678_v55, 0.0  ;;  %v749_v59 = vmul.f32 %v1264_v60, %v678_v55  ;;  %vm726_vm11 = vcmp.gt.f32.partialorder %v694_v56, 0.0  ;;  %v765_v61 = vmul.f32 %v1264_v60, %v694_v56 }
 0x10e   :  { %v929_v62 = vpop.f32.mrb[13].mxu0  ;;  %v977_v63 = vpop.f32.mrb[13].mxu1  ;;  %v780_v4 = vsel %vm709_vm8, %v677_v48, %v748_v53  ;;  %v796_v5 = vsel %vm725_vm9, %v693_v49, %v764_v54 }
 0x10f   :  { %v930_v0 = vadd.f32 %v929_v62, %v928_v57  ;;  %v978_v1 = vadd.f32 %v977_v63, %v976_v58  ;;  %v931_v2 = vpop.f32.mrb[14].mxu0  ;;  %v979_v3 = vpop.f32.mrb[14].mxu1  ;;  %v781_v6 = vsel %vm710_vm10, %v678_v55, %v749_v59  ;;  %v797_v7 = vsel %vm726_vm11, %v694_v56, %v765_v61 }
 0x110   :  { %v932_v8 = vpop.f32.mrb[15].mxu0  ;;  %v980_v9 = vpop.f32.mrb[15].mxu1  ;;  %v810_v10 = vpack.c.bf16 %v781_v6, %v780_v4  ;;  %v818_v11 = vpack.c.bf16 %v797_v7, %v796_v5 }
 0x111   :  { %v679_v12 = vadd.f32 %v930_v0, %v1258_v51  ;;  %v695_v13 = vadd.f32 %v978_v1, %v1258_v51  ;;  %v933_v14 = vadd.f32 %v932_v8, %v931_v2  ;;  %v981_v15 = vadd.f32 %v980_v9, %v979_v3 }
 0x112   :  { %826 = vst [vmem:[%s1381_s4 + $0x10] sm:$0xff] %v810_v10  ;;  %834 = vst [vmem:[%s1381_s4 + $0x50] sm:$0xff] %v818_v11 }
 0x113   :  { %v750_v16 = vmul.f32 %v1264_v60, %v679_v12  ;;  %v766_v17 = vmul.f32 %v1264_v60, %v695_v13  ;;  %v680_v18 = vadd.f32 %v933_v14, %v1258_v51  ;;  %v696_v19 = vadd.f32 %v981_v15, %v1258_v51 }
 0x114   :  { %vm711_vm12 = vcmp.gt.f32.partialorder %v679_v12, 0.0  ;;  %vm727_vm13 = vcmp.gt.f32.partialorder %v695_v13, 0.0 }
 0x115   :  { %v934_v20 = vpop.f32.mrb[16].mxu0  ;;  %v982_v21 = vpop.f32.mrb[16].mxu1  ;;  %vm712_vm14 = vcmp.gt.f32.partialorder %v680_v18, 0.0  ;;  %v751_v22 = vmul.f32 %v1264_v60, %v680_v18  ;;  %vm728_vm15 = vcmp.gt.f32.partialorder %v696_v19, 0.0  ;;  %v767_v23 = vmul.f32 %v1264_v60, %v696_v19 }
 0x116   :  { %v935_v24 = vpop.f32.mrb[17].mxu0  ;;  %v983_v25 = vpop.f32.mrb[17].mxu1  ;;  %v782_v30 = vsel %vm711_vm12, %v679_v12, %v750_v16  ;;  %v798_v31 = vsel %vm727_vm13, %v695_v13, %v766_v17 }
 0x117   :  { %v936_v26 = vadd.f32 %v935_v24, %v934_v20  ;;  %v984_v27 = vadd.f32 %v983_v25, %v982_v21  ;;  %v937_v28 = vpop.f32.mrb[18].mxu0  ;;  %v985_v29 = vpop.f32.mrb[18].mxu1  ;;  %v783_v32 = vsel %vm712_vm14, %v680_v18, %v751_v22  ;;  %v799_v33 = vsel %vm728_vm15, %v696_v19, %v767_v23 }
 0x118   :  { %v938_v34 = vpop.f32.mrb[19].mxu0  ;;  %v986_v35 = vpop.f32.mrb[19].mxu1  ;;  %v811_v36 = vpack.c.bf16 %v783_v32, %v782_v30  ;;  %v819_v37 = vpack.c.bf16 %v799_v33, %v798_v31 }
 0x119   :  { %v681_v38 = vadd.f32 %v936_v26, %v1258_v51  ;;  %v697_v39 = vadd.f32 %v984_v27, %v1258_v51  ;;  %v939_v40 = vadd.f32 %v938_v34, %v937_v28  ;;  %v987_v41 = vadd.f32 %v986_v35, %v985_v29 }
 0x11a   :  { %827 = vst [vmem:[%s1381_s4 + $0x18] sm:$0xff] %v811_v36  ;;  %835 = vst [vmem:[%s1381_s4 + $0x58] sm:$0xff] %v819_v37 }
 0x11b   :  { %v752_v42 = vmul.f32 %v1264_v60, %v681_v38  ;;  %v768_v43 = vmul.f32 %v1264_v60, %v697_v39  ;;  %v682_v44 = vadd.f32 %v939_v40, %v1258_v51  ;;  %v698_v45 = vadd.f32 %v987_v41, %v1258_v51 }
 0x11c   :  { %vm713_vm0 = vcmp.gt.f32.partialorder %v681_v38, 0.0  ;;  %vm729_vm1 = vcmp.gt.f32.partialorder %v697_v39, 0.0 }
 0x11d   :  { %v940_v46 = vpop.f32.mrb[20].mxu0  ;;  %v988_v47 = vpop.f32.mrb[20].mxu1  ;;  %vm714_vm2 = vcmp.gt.f32.partialorder %v682_v44, 0.0  ;;  %v753_v48 = vmul.f32 %v1264_v60, %v682_v44  ;;  %vm730_vm3 = vcmp.gt.f32.partialorder %v698_v45, 0.0  ;;  %v769_v49 = vmul.f32 %v1264_v60, %v698_v45 }
 0x11e   :  { %v941_v50 = vpop.f32.mrb[21].mxu0  ;;  %v989_v52 = vpop.f32.mrb[21].mxu1  ;;  %v784_v57 = vsel %vm713_vm0, %v681_v38, %v752_v42  ;;  %v800_v58 = vsel %vm729_vm1, %v697_v39, %v768_v43 }
 0x11f   :  { %v942_v53 = vadd.f32 %v941_v50, %v940_v46  ;;  %v990_v54 = vadd.f32 %v989_v52, %v988_v47  ;;  %v943_v55 = vpop.f32.mrb[22].mxu0  ;;  %v991_v56 = vpop.f32.mrb[22].mxu1  ;;  %v785_v59 = vsel %vm714_vm2, %v682_v44, %v753_v48  ;;  %v801_v61 = vsel %vm730_vm3, %v698_v45, %v769_v49 }
 0x120   :  { %v944_v62 = vpop.f32.mrb[23].mxu0  ;;  %v992_v63 = vpop.f32.mrb[23].mxu1  ;;  %v812_v0 = vpack.c.bf16 %v785_v59, %v784_v57  ;;  %v820_v1 = vpack.c.bf16 %v801_v61, %v800_v58 }
 0x121   :  { %v683_v2 = vadd.f32 %v942_v53, %v1258_v51  ;;  %v699_v3 = vadd.f32 %v990_v54, %v1258_v51  ;;  %v945_v4 = vadd.f32 %v944_v62, %v943_v55  ;;  %v993_v5 = vadd.f32 %v992_v63, %v991_v56 }
 0x122   :  { %828 = vst [vmem:[%s1381_s4 + $0x20] sm:$0xff] %v812_v0  ;;  %836 = vst [vmem:[%s1381_s4 + $0x60] sm:$0xff] %v820_v1 }
 0x123   :  { %v754_v6 = vmul.f32 %v1264_v60, %v683_v2  ;;  %v770_v7 = vmul.f32 %v1264_v60, %v699_v3  ;;  %v684_v8 = vadd.f32 %v945_v4, %v1258_v51  ;;  %v700_v9 = vadd.f32 %v993_v5, %v1258_v51 }
 0x124   :  { %vm715_vm4 = vcmp.gt.f32.partialorder %v683_v2, 0.0  ;;  %vm731_vm5 = vcmp.gt.f32.partialorder %v699_v3, 0.0 }
 0x125   :  { %v946_v10 = vpop.f32.mrb[24].mxu0  ;;  %v994_v11 = vpop.f32.mrb[24].mxu1  ;;  %vm716_vm6 = vcmp.gt.f32.partialorder %v684_v8, 0.0  ;;  %v755_v12 = vmul.f32 %v1264_v60, %v684_v8  ;;  %vm732_vm7 = vcmp.gt.f32.partialorder %v700_v9, 0.0  ;;  %v771_v13 = vmul.f32 %v1264_v60, %v700_v9 }
 0x126   :  { %v947_v14 = vpop.f32.mrb[25].mxu0  ;;  %v995_v15 = vpop.f32.mrb[25].mxu1  ;;  %v786_v20 = vsel %vm715_vm4, %v683_v2, %v754_v6  ;;  %v802_v21 = vsel %vm731_vm5, %v699_v3, %v770_v7 }
 0x127   :  { %v948_v16 = vadd.f32 %v947_v14, %v946_v10  ;;  %v996_v17 = vadd.f32 %v995_v15, %v994_v11  ;;  %v949_v18 = vpop.f32.mrb[26].mxu0  ;;  %v997_v19 = vpop.f32.mrb[26].mxu1  ;;  %v787_v22 = vsel %vm716_vm6, %v684_v8, %v755_v12  ;;  %v803_v23 = vsel %vm732_vm7, %v700_v9, %v771_v13 }
 0x128   :  { %v950_v24 = vpop.f32.mrb[27].mxu0  ;;  %v998_v25 = vpop.f32.mrb[27].mxu1  ;;  %v813_v26 = vpack.c.bf16 %v787_v22, %v786_v20  ;;  %v821_v27 = vpack.c.bf16 %v803_v23, %v802_v21 }
 0x129   :  { %v685_v28 = vadd.f32 %v948_v16, %v1258_v51  ;;  %v701_v29 = vadd.f32 %v996_v17, %v1258_v51  ;;  %v951_v30 = vadd.f32 %v950_v24, %v949_v18  ;;  %v999_v31 = vadd.f32 %v998_v25, %v997_v19 }
 0x12a   :  { %829 = vst [vmem:[%s1381_s4 + $0x28] sm:$0xff] %v813_v26  ;;  %837 = vst [vmem:[%s1381_s4 + $0x68] sm:$0xff] %v821_v27 }
 0x12b   :  { %v756_v32 = vmul.f32 %v1264_v60, %v685_v28  ;;  %v772_v33 = vmul.f32 %v1264_v60, %v701_v29  ;;  %v686_v34 = vadd.f32 %v951_v30, %v1258_v51  ;;  %v702_v35 = vadd.f32 %v999_v31, %v1258_v51 }
 0x12c   :  { %vm717_vm8 = vcmp.gt.f32.partialorder %v685_v28, 0.0  ;;  %vm733_vm9 = vcmp.gt.f32.partialorder %v701_v29, 0.0 }
 0x12d   :  { %v952_v36 = vpop.f32.mrb[28].mxu0  ;;  %v1000_v37 = vpop.f32.mrb[28].mxu1  ;;  %vm718_vm10 = vcmp.gt.f32.partialorder %v686_v34, 0.0  ;;  %v757_v38 = vmul.f32 %v1264_v60, %v686_v34  ;;  %vm734_vm11 = vcmp.gt.f32.partialorder %v702_v35, 0.0  ;;  %v773_v39 = vmul.f32 %v1264_v60, %v702_v35 }
 0x12e   :  { %v953_v40 = vpop.f32.mrb[29].mxu0  ;;  %v1001_v41 = vpop.f32.mrb[29].mxu1  ;;  %v788_v46 = vsel %vm717_vm8, %v685_v28, %v756_v32  ;;  %v804_v47 = vsel %vm733_vm9, %v701_v29, %v772_v33 }
 0x12f   :  { %v954_v42 = vadd.f32 %v953_v40, %v952_v36  ;;  %v1002_v43 = vadd.f32 %v1001_v41, %v1000_v37  ;;  %v955_v44 = vpop.f32.mrb[30].mxu0  ;;  %v1003_v45 = vpop.f32.mrb[30].mxu1  ;;  %v789_v48 = vsel %vm718_vm10, %v686_v34, %v757_v38  ;;  %v805_v49 = vsel %vm734_vm11, %v702_v35, %v773_v39 }
 0x130   :  { %v956_v50 = vpop.f32.mrb[31].mxu0  ;;  %v1004_v52 = vpop.f32.mrb[31].mxu1  ;;  %v814_v53 = vpack.c.bf16 %v789_v48, %v788_v46  ;;  %v822_v54 = vpack.c.bf16 %v805_v49, %v804_v47 }
 0x131   :  { %v687_v55 = vadd.f32 %v954_v42, %v1258_v51  ;;  %v703_v56 = vadd.f32 %v1002_v43, %v1258_v51  ;;  %v957_v57 = vadd.f32 %v956_v50, %v955_v44  ;;  %v1005_v58 = vadd.f32 %v1004_v52, %v1003_v45 }
 0x132   :  { %830 = vst [vmem:[%s1381_s4 + $0x30] sm:$0xff] %v814_v53  ;;  %838 = vst [vmem:[%s1381_s4 + $0x70] sm:$0xff] %v822_v54 }
 0x133   :  { %v758_v59 = vmul.f32 %v1264_v60, %v687_v55  ;;  %v774_v61 = vmul.f32 %v1264_v60, %v703_v56  ;;  %v688_v62 = vadd.f32 %v957_v57, %v1258_v51  ;;  %v704_v63 = vadd.f32 %v1005_v58, %v1258_v51 }
 0x134   :  { %vm719_vm12 = vcmp.gt.f32.partialorder %v687_v55, 0.0  ;;  %vm735_vm13 = vcmp.gt.f32.partialorder %v703_v56, 0.0 }
 0x135   :  { %vm720_vm14 = vcmp.gt.f32.partialorder %v688_v62, 0.0  ;;  %v759_v0 = vmul.f32 %v1264_v60, %v688_v62  ;;  %vm736_vm15 = vcmp.gt.f32.partialorder %v704_v63, 0.0  ;;  %v775_v1 = vmul.f32 %v1264_v60, %v704_v63 }
 0x136   :  { %v790_v2 = vsel %vm719_vm12, %v687_v55, %v758_v59  ;;  %v806_v3 = vsel %vm735_vm13, %v703_v56, %v774_v61 }
 0x137   :  { %v791_v4 = vsel %vm720_vm14, %v688_v62, %v759_v0  ;;  %v807_v5 = vsel %vm736_vm15, %v704_v63, %v775_v1 }
 0x138   :  { %v815_v6 = vpack.c.bf16 %v791_v4, %v790_v2  ;;  %v823_v7 = vpack.c.bf16 %v807_v5, %v806_v3 }
 0x13a   :  { %831 = vst [vmem:[%s1381_s4 + $0x38] sm:$0xff] %v815_v6  ;;  %839 = vst [vmem:[%s1381_s4 + $0x78] sm:$0xff] %v823_v7 }

// kernel: gconv_forward.3
= control target key start
LH: loop header
LB: loop body
LE: loop exit
PB: predicated region body
PF: predicated region fallthrough
CT: control target
= control target key end

     0   :  { %s1664_s1 = inlined_call_operand.vmem [shape: bf16[256,128], index: 1, kind: input, shape index: {}]   ;;  %s1665_s0 = inlined_call_operand.vmem [shape: bf16[256,256], index: 0, kind: input, shape index: {}]   ;;  %s1666_s2 = inlined_call_operand.vmem [shape: f32[1,128], index: 2, kind: input, shape index: {}]   ;;  %s1667_s3 = inlined_call_operand.vmem [shape: f32[1,128], index: 3, kind: input, shape index: {}]   ;;  %s1668_s4 = inlined_call_operand.vmem [shape: bf16[256,128], index: 4, kind: output, shape index: {}]  }
   0x1   :  { %v1309_v0 = vld [vmem:[%s1664_s1 + $0x40] sm:$0xff]   ;;  %v1311_v2 = vld [vmem:[%s1664_s1 + $0x48] sm:$0xff]   ;;  %v1313_v4 = vld [vmem:[%s1664_s1 + $0x50] sm:$0xff]  }
   0x2   :  { %v1310_v1 = vld [vmem:[%s1664_s1] sm:$0xff]   ;;  %1181 = vmatprep.subr.bf16.mxu0 %v1309_v0  ;;  %1293 = vmatprep.subr.bf16.mxu1 %v1309_v0  ;;  %v1312_v3 = vld [vmem:[%s1664_s1 + $0x8] sm:$0xff]   ;;  %v1314_v5 = vld [vmem:[%s1664_s1 + $0x10] sm:$0xff]  }
   0x3   :  { %1182 = vmatpush3.bf16.msra.mxu0 %v1310_v1  ;;  %1301 = vmatpush3.bf16.msra.mxu1 %v1310_v1  ;;  %v1315_v6 = vld [vmem:[%s1664_s1 + $0x58] sm:$0xff]   ;;  %v1317_v8 = vld [vmem:[%s1664_s1 + $0x60] sm:$0xff]   ;;  %v1319_v10 = vld [vmem:[%s1664_s1 + $0x68] sm:$0xff]  }
   0x4   :  { %1183 = vmatprep.subr.bf16.mxu0 %v1311_v2  ;;  %1294 = vmatprep.subr.bf16.mxu1 %v1311_v2  ;;  %v1316_v7 = vld [vmem:[%s1664_s1 + $0x18] sm:$0xff]   ;;  %v1318_v9 = vld [vmem:[%s1664_s1 + $0x20] sm:$0xff]   ;;  %v1320_v13 = vld [vmem:[%s1664_s1 + $0x28] sm:$0xff]  }
   0x5   :  { %v1327_v11 = vld [vmem:[%s1665_s0 + $0x4] ss:$8 sps:$4 sm:$0xff]   ;;  %v1321_v14 = vld [vmem:[%s1664_s1 + $0x70] sm:$0xff]   ;;  %v1323_v16 = vld [vmem:[%s1664_s1 + $0x78] sm:$0xff]  }
   0x6   :  { %v1330_v12 = vld [vmem:[%s1665_s0 + $0x84] ss:$8 sps:$4 sm:$0xff]   ;;  %438 = vmatprep.mubr.bf16.mxu0 %v1327_v11  ;;  %v1322_v15 = vld [vmem:[%s1664_s1 + $0x30] sm:$0xff]   ;;  %v1324_v17 = vld [vmem:[%s1664_s1 + $0x38] sm:$0xff]  }
   0x7   :  { %1184 = vmatpush3.bf16.msra.mxu0 %v1312_v3  ;;  %1302 = vmatpush3.bf16.msra.mxu1 %v1312_v3  ;;  %v1325_v18 = vld [vmem:[%s1665_s0] ss:$8 sps:$4 sm:$0xff]   ;;  %v1331_v20 = vld [vmem:[%s1665_s0 + $0x14] ss:$8 sps:$4 sm:$0xff]   ;;  %v1335_v22 = vld [vmem:[%s1665_s0 + $0x10] ss:$8 sps:$4 sm:$0xff]  }
   0x8   :  { %1185 = vmatprep.subr.bf16.mxu0 %v1313_v4  ;;  %1295 = vmatprep.subr.bf16.mxu1 %v1313_v4  ;;  %v1328_v19 = vld [vmem:[%s1665_s0 + $0x80] ss:$8 sps:$4 sm:$0xff]   ;;  %v1333_v21 = vld [vmem:[%s1665_s0 + $0x94] ss:$8 sps:$4 sm:$0xff]   ;;  %v1336_v23 = vld [vmem:[%s1665_s0 + $0x90] ss:$8 sps:$4 sm:$0xff]  }
   0x9   :  { %502 = vmatprep.mubr.bf16.mxu1 %v1330_v12  ;;  %v1337_v24 = vld [vmem:[%s1665_s0 + $0x24] ss:$8 sps:$4 sm:$0xff]   ;;  %v1341_v26 = vld [vmem:[%s1665_s0 + $0x20] ss:$8 sps:$4 sm:$0xff]   ;;  %v1343_v28 = vld [vmem:[%s1665_s0 + $0x34] ss:$8 sps:$4 sm:$0xff]  }
   0xa   :  { %v1339_v25 = vld [vmem:[%s1665_s0 + $0xa4] ss:$8 sps:$4 sm:$0xff]   ;;  %v1342_v27 = vld [vmem:[%s1665_s0 + $0xa0] ss:$8 sps:$4 sm:$0xff]   ;;  %v1345_v29 = vld [vmem:[%s1665_s0 + $0xb4] ss:$8 sps:$4 sm:$0xff]  }
   0xb   :  { %1186 = vmatpush3.bf16.msra.mxu0 %v1314_v5  ;;  %1303 = vmatpush3.bf16.msra.mxu1 %v1314_v5  ;;  %v1347_v30 = vld [vmem:[%s1665_s0 + $0x30] ss:$8 sps:$4 sm:$0xff]   ;;  %v1349_v32 = vld [vmem:[%s1665_s0 + $0x44] ss:$8 sps:$4 sm:$0xff]   ;;  %v1353_v34 = vld [vmem:[%s1665_s0 + $0x40] ss:$8 sps:$4 sm:$0xff]  }
   0xc   :  { %1187 = vmatprep.subr.bf16.mxu0 %v1315_v6  ;;  %1296 = vmatprep.subr.bf16.mxu1 %v1315_v6  ;;  %v1348_v31 = vld [vmem:[%s1665_s0 + $0xb0] ss:$8 sps:$4 sm:$0xff]   ;;  %v1351_v33 = vld [vmem:[%s1665_s0 + $0xc4] ss:$8 sps:$4 sm:$0xff]   ;;  %v1354_v35 = vld [vmem:[%s1665_s0 + $0xc0] ss:$8 sps:$4 sm:$0xff]  }
   0xd   :  { %v1355_v36 = vld [vmem:[%s1665_s0 + $0x54] ss:$8 sps:$4 sm:$0xff]   ;;  %v1359_v38 = vld [vmem:[%s1665_s0 + $0x50] ss:$8 sps:$4 sm:$0xff]   ;;  %v1361_v40 = vld [vmem:[%s1665_s0 + $0x64] ss:$8 sps:$4 sm:$0xff]  }
   0xe   :  { %v1357_v37 = vld [vmem:[%s1665_s0 + $0xd4] ss:$8 sps:$4 sm:$0xff]   ;;  %v1360_v39 = vld [vmem:[%s1665_s0 + $0xd0] ss:$8 sps:$4 sm:$0xff]   ;;  %v1363_v41 = vld [vmem:[%s1665_s0 + $0xe4] ss:$8 sps:$4 sm:$0xff]  }
   0xf   :  { %1188 = vmatpush3.bf16.msra.mxu0 %v1316_v7  ;;  %1304 = vmatpush3.bf16.msra.mxu1 %v1316_v7  ;;  %v1365_v42 = vld [vmem:[%s1665_s0 + $0x60] ss:$8 sps:$4 sm:$0xff]   ;;  %v1367_v44 = vld [vmem:[%s1665_s0 + $0x74] ss:$8 sps:$4 sm:$0xff]   ;;  %v1371_v46 = vld [vmem:[%s1665_s0 + $0x70] ss:$8 sps:$4 sm:$0xff]  }
  0x10   :  { %1189 = vmatprep.subr.bf16.mxu0 %v1317_v8  ;;  %1297 = vmatprep.subr.bf16.mxu1 %v1317_v8  ;;  %v1366_v43 = vld [vmem:[%s1665_s0 + $0xe0] ss:$8 sps:$4 sm:$0xff]   ;;  %v1369_v45 = vld [vmem:[%s1665_s0 + $0xf4] ss:$8 sps:$4 sm:$0xff]   ;;  %v1372_v47 = vld [vmem:[%s1665_s0 + $0xf0] ss:$8 sps:$4 sm:$0xff]  }
  0x11   :  { %v1545_v51 = vld [vmem:[%s1666_s2] ss:$0 sm:$0xff] }
  0x12   :  { %v1551_v60 = vld [vmem:[%s1667_s3] ss:$0 sm:$0xff] }
  0x13   :  { %1190 = vmatpush3.bf16.msra.mxu0 %v1318_v9  ;;  %1305 = vmatpush3.bf16.msra.mxu1 %v1318_v9 }
  0x14   :  { %1191 = vmatprep.subr.bf16.mxu0 %v1319_v10  ;;  %1298 = vmatprep.subr.bf16.mxu1 %v1319_v10 }
  0x17   :  { %1192 = vmatpush3.bf16.msra.mxu0 %v1320_v13  ;;  %1306 = vmatpush3.bf16.msra.mxu1 %v1320_v13 }
  0x18   :  { %1193 = vmatprep.subr.bf16.mxu0 %v1321_v14  ;;  %1299 = vmatprep.subr.bf16.mxu1 %v1321_v14 }
  0x1b   :  { %1194 = vmatpush3.bf16.msra.mxu0 %v1322_v15  ;;  %1307 = vmatpush3.bf16.msra.mxu1 %v1322_v15 }
  0x1c   :  { %1195 = vmatprep.subr.bf16.mxu0 %v1323_v16  ;;  %1300 = vmatprep.subr.bf16.mxu1 %v1323_v16 }
  0x1f   :  { %1196 = vmatpush3.bf16.msra.mxu0 %v1324_v17  ;;  %1308 = vmatpush3.bf16.msra.mxu1 %v1324_v17 }
  0x22   :  { %439 = vmatmul.mubr.bf16.vlgmr.msra.gmra.mrb[0].mxu0 %v1325_v18  ;;  %503 = vmatmul.mubr.bf16.vlgmr.msra.gmra.mrb[0].mxu1 %v1328_v19 }
  0x23   :  { %446 = vmatprep.mubr.bf16.mxu0 %v1331_v20  ;;  %510 = vmatprep.mubr.bf16.mxu1 %v1333_v21 }
  0x2a   :  { %447 = vmatmul.mubr.bf16.gmra.mrb[4].mxu0 %v1335_v22  ;;  %511 = vmatmul.mubr.bf16.gmra.mrb[4].mxu1 %v1336_v23 }
  0x2b   :  { %454 = vmatprep.mubr.bf16.mxu0 %v1337_v24  ;;  %518 = vmatprep.mubr.bf16.mxu1 %v1339_v25 }
  0x32   :  { %455 = vmatmul.mubr.bf16.gmra.mrb[8].mxu0 %v1341_v26  ;;  %519 = vmatmul.mubr.bf16.gmra.mrb[8].mxu1 %v1342_v27 }
  0x33   :  { %462 = vmatprep.mubr.bf16.mxu0 %v1343_v28  ;;  %526 = vmatprep.mubr.bf16.mxu1 %v1345_v29 }
  0x3a   :  { %463 = vmatmul.mubr.bf16.gmra.mrb[12].mxu0 %v1347_v30  ;;  %527 = vmatmul.mubr.bf16.gmra.mrb[12].mxu1 %v1348_v31 }
  0x3b   :  { %470 = vmatprep.mubr.bf16.mxu0 %v1349_v32  ;;  %534 = vmatprep.mubr.bf16.mxu1 %v1351_v33 }
  0x42   :  { %471 = vmatmul.mubr.bf16.gmra.mrb[16].mxu0 %v1353_v34  ;;  %535 = vmatmul.mubr.bf16.gmra.mrb[16].mxu1 %v1354_v35 }
  0x43   :  { %478 = vmatprep.mubr.bf16.mxu0 %v1355_v36  ;;  %542 = vmatprep.mubr.bf16.mxu1 %v1357_v37 }
  0x4a   :  { %479 = vmatmul.mubr.bf16.gmra.mrb[20].mxu0 %v1359_v38  ;;  %543 = vmatmul.mubr.bf16.gmra.mrb[20].mxu1 %v1360_v39 }
  0x4b   :  { %486 = vmatprep.mubr.bf16.mxu0 %v1361_v40  ;;  %550 = vmatprep.mubr.bf16.mxu1 %v1363_v41 }
  0x52   :  { %487 = vmatmul.mubr.bf16.gmra.mrb[24].mxu0 %v1365_v42  ;;  %551 = vmatmul.mubr.bf16.gmra.mrb[24].mxu1 %v1366_v43 }
  0x53   :  { %494 = vmatprep.mubr.bf16.mxu0 %v1367_v44  ;;  %558 = vmatprep.mubr.bf16.mxu1 %v1369_v45 }
  0x5a   :  { %495 = vmatmul.mubr.bf16.gmra.mrb[28].mxu0 %v1371_v46  ;;  %559 = vmatmul.mubr.bf16.gmra.mrb[28].mxu1 %v1372_v47 }
  0xf5   :  { %v1197_v48 = vpop.f32.mrb[0].mxu0  ;;  %v1245_v49 = vpop.f32.mrb[0].mxu1 }
  0xf6   :  { %v1198_v50 = vpop.f32.mrb[1].mxu0  ;;  %v1246_v52 = vpop.f32.mrb[1].mxu1 }
  0xf7   :  { %v1199_v53 = vadd.f32 %v1198_v50, %v1197_v48  ;;  %v1247_v54 = vadd.f32 %v1246_v52, %v1245_v49  ;;  %v1200_v55 = vpop.f32.mrb[2].mxu0  ;;  %v1248_v56 = vpop.f32.mrb[2].mxu1 }
  0xf8   :  { %v1201_v57 = vpop.f32.mrb[3].mxu0  ;;  %v1249_v58 = vpop.f32.mrb[3].mxu1 }
  0xf9   :  { %v673_v59 = vadd.f32 %v1199_v53, %v1545_v51  ;;  %v689_v61 = vadd.f32 %v1247_v54, %v1545_v51  ;;  %v1202_v62 = vadd.f32 %v1201_v57, %v1200_v55  ;;  %v1250_v63 = vadd.f32 %v1249_v58, %v1248_v56 }
  0xfb   :  { %v744_v0 = vmul.f32 %v1551_v60, %v673_v59  ;;  %v760_v1 = vmul.f32 %v1551_v60, %v689_v61  ;;  %v674_v2 = vadd.f32 %v1202_v62, %v1545_v51  ;;  %v690_v3 = vadd.f32 %v1250_v63, %v1545_v51 }
  0xfc   :  { %vm705_vm0 = vcmp.gt.f32.partialorder %v673_v59, 0.0  ;;  %vm721_vm1 = vcmp.gt.f32.partialorder %v689_v61, 0.0 }
  0xfd   :  { %v1203_v4 = vpop.f32.mrb[4].mxu0  ;;  %v1251_v5 = vpop.f32.mrb[4].mxu1  ;;  %vm706_vm2 = vcmp.gt.f32.partialorder %v674_v2, 0.0  ;;  %v745_v6 = vmul.f32 %v1551_v60, %v674_v2  ;;  %vm722_vm3 = vcmp.gt.f32.partialorder %v690_v3, 0.0  ;;  %v761_v7 = vmul.f32 %v1551_v60, %v690_v3 }
  0xfe   :  { %v1204_v8 = vpop.f32.mrb[5].mxu0  ;;  %v1252_v9 = vpop.f32.mrb[5].mxu1  ;;  %v776_v14 = vsel %vm705_vm0, %v673_v59, %v744_v0  ;;  %v792_v15 = vsel %vm721_vm1, %v689_v61, %v760_v1 }
  0xff   :  { %v1205_v10 = vadd.f32 %v1204_v8, %v1203_v4  ;;  %v1253_v11 = vadd.f32 %v1252_v9, %v1251_v5  ;;  %v1206_v12 = vpop.f32.mrb[6].mxu0  ;;  %v1254_v13 = vpop.f32.mrb[6].mxu1  ;;  %v777_v16 = vsel %vm706_vm2, %v674_v2, %v745_v6  ;;  %v793_v17 = vsel %vm722_vm3, %v690_v3, %v761_v7 }
 0x100   :  { %v1207_v18 = vpop.f32.mrb[7].mxu0  ;;  %v1255_v19 = vpop.f32.mrb[7].mxu1  ;;  %v1089_v20 = vpack.c.bf16 %v777_v16, %v776_v14  ;;  %v1129_v21 = vpack.c.bf16 %v793_v17, %v792_v15 }
 0x101   :  { %v675_v22 = vadd.f32 %v1205_v10, %v1545_v51  ;;  %v691_v23 = vadd.f32 %v1253_v11, %v1545_v51  ;;  %v1208_v24 = vadd.f32 %v1207_v18, %v1206_v12  ;;  %v1256_v25 = vadd.f32 %v1255_v19, %v1254_v13 }
 0x102   :  { %1090 = vst [vmem:[%s1668_s4] sm:$0xff] %v1089_v20   ;;  %1173 = vst [vmem:[%s1668_s4 + $0x40] sm:$0xff] %v1129_v21  }
 0x103   :  { %v746_v26 = vmul.f32 %v1551_v60, %v675_v22  ;;  %v762_v27 = vmul.f32 %v1551_v60, %v691_v23  ;;  %v676_v28 = vadd.f32 %v1208_v24, %v1545_v51  ;;  %v692_v29 = vadd.f32 %v1256_v25, %v1545_v51 }
 0x104   :  { %vm707_vm4 = vcmp.gt.f32.partialorder %v675_v22, 0.0  ;;  %vm723_vm5 = vcmp.gt.f32.partialorder %v691_v23, 0.0 }
 0x105   :  { %v1209_v30 = vpop.f32.mrb[8].mxu0  ;;  %v1257_v31 = vpop.f32.mrb[8].mxu1  ;;  %vm708_vm6 = vcmp.gt.f32.partialorder %v676_v28, 0.0  ;;  %v747_v32 = vmul.f32 %v1551_v60, %v676_v28  ;;  %vm724_vm7 = vcmp.gt.f32.partialorder %v692_v29, 0.0  ;;  %v763_v33 = vmul.f32 %v1551_v60, %v692_v29 }
 0x106   :  { %v1210_v34 = vpop.f32.mrb[9].mxu0  ;;  %v1258_v35 = vpop.f32.mrb[9].mxu1  ;;  %v778_v40 = vsel %vm707_vm4, %v675_v22, %v746_v26  ;;  %v794_v41 = vsel %vm723_vm5, %v691_v23, %v762_v27 }
 0x107   :  { %v1211_v36 = vadd.f32 %v1210_v34, %v1209_v30  ;;  %v1259_v37 = vadd.f32 %v1258_v35, %v1257_v31  ;;  %v1212_v38 = vpop.f32.mrb[10].mxu0  ;;  %v1260_v39 = vpop.f32.mrb[10].mxu1  ;;  %v779_v42 = vsel %vm708_vm6, %v676_v28, %v747_v32  ;;  %v795_v43 = vsel %vm724_vm7, %v692_v29, %v763_v33 }
 0x108   :  { %v1213_v44 = vpop.f32.mrb[11].mxu0  ;;  %v1261_v45 = vpop.f32.mrb[11].mxu1  ;;  %v1094_v46 = vpack.c.bf16 %v779_v42, %v778_v40  ;;  %v1134_v47 = vpack.c.bf16 %v795_v43, %v794_v41 }
 0x109   :  { %v677_v48 = vadd.f32 %v1211_v36, %v1545_v51  ;;  %v693_v49 = vadd.f32 %v1259_v37, %v1545_v51  ;;  %v1214_v50 = vadd.f32 %v1213_v44, %v1212_v38  ;;  %v1262_v52 = vadd.f32 %v1261_v45, %v1260_v39 }
 0x10a   :  { %1166 = vst [vmem:[%s1668_s4 + $0x8] sm:$0xff] %v1094_v46   ;;  %1174 = vst [vmem:[%s1668_s4 + $0x48] sm:$0xff] %v1134_v47  }
 0x10b   :  { %v748_v53 = vmul.f32 %v1551_v60, %v677_v48  ;;  %v764_v54 = vmul.f32 %v1551_v60, %v693_v49  ;;  %v678_v55 = vadd.f32 %v1214_v50, %v1545_v51  ;;  %v694_v56 = vadd.f32 %v1262_v52, %v1545_v51 }
 0x10c   :  { %vm709_vm8 = vcmp.gt.f32.partialorder %v677_v48, 0.0  ;;  %vm725_vm9 = vcmp.gt.f32.partialorder %v693_v49, 0.0 }
 0x10d   :  { %v1215_v57 = vpop.f32.mrb[12].mxu0  ;;  %v1263_v58 = vpop.f32.mrb[12].mxu1  ;;  %vm710_vm10 = vcmp.gt.f32.partialorder %v678_v55, 0.0  ;;  %v749_v59 = vmul.f32 %v1551_v60, %v678_v55  ;;  %vm726_vm11 = vcmp.gt.f32.partialorder %v694_v56, 0.0  ;;  %v765_v61 = vmul.f32 %v1551_v60, %v694_v56 }
 0x10e   :  { %v1216_v62 = vpop.f32.mrb[13].mxu0  ;;  %v1264_v63 = vpop.f32.mrb[13].mxu1  ;;  %v780_v4 = vsel %vm709_vm8, %v677_v48, %v748_v53  ;;  %v796_v5 = vsel %vm725_vm9, %v693_v49, %v764_v54 }
 0x10f   :  { %v1217_v0 = vadd.f32 %v1216_v62, %v1215_v57  ;;  %v1265_v1 = vadd.f32 %v1264_v63, %v1263_v58  ;;  %v1218_v2 = vpop.f32.mrb[14].mxu0  ;;  %v1266_v3 = vpop.f32.mrb[14].mxu1  ;;  %v781_v6 = vsel %vm710_vm10, %v678_v55, %v749_v59  ;;  %v797_v7 = vsel %vm726_vm11, %v694_v56, %v765_v61 }
 0x110   :  { %v1219_v8 = vpop.f32.mrb[15].mxu0  ;;  %v1267_v9 = vpop.f32.mrb[15].mxu1  ;;  %v1099_v10 = vpack.c.bf16 %v781_v6, %v780_v4  ;;  %v1139_v11 = vpack.c.bf16 %v797_v7, %v796_v5 }
 0x111   :  { %v679_v12 = vadd.f32 %v1217_v0, %v1545_v51  ;;  %v695_v13 = vadd.f32 %v1265_v1, %v1545_v51  ;;  %v1220_v14 = vadd.f32 %v1219_v8, %v1218_v2  ;;  %v1268_v15 = vadd.f32 %v1267_v9, %v1266_v3 }
 0x112   :  { %1167 = vst [vmem:[%s1668_s4 + $0x10] sm:$0xff] %v1099_v10   ;;  %1175 = vst [vmem:[%s1668_s4 + $0x50] sm:$0xff] %v1139_v11  }
 0x113   :  { %v750_v16 = vmul.f32 %v1551_v60, %v679_v12  ;;  %v766_v17 = vmul.f32 %v1551_v60, %v695_v13  ;;  %v680_v18 = vadd.f32 %v1220_v14, %v1545_v51  ;;  %v696_v19 = vadd.f32 %v1268_v15, %v1545_v51 }
 0x114   :  { %vm711_vm12 = vcmp.gt.f32.partialorder %v679_v12, 0.0  ;;  %vm727_vm13 = vcmp.gt.f32.partialorder %v695_v13, 0.0 }
 0x115   :  { %v1221_v20 = vpop.f32.mrb[16].mxu0  ;;  %v1269_v21 = vpop.f32.mrb[16].mxu1  ;;  %vm712_vm14 = vcmp.gt.f32.partialorder %v680_v18, 0.0  ;;  %v751_v22 = vmul.f32 %v1551_v60, %v680_v18  ;;  %vm728_vm15 = vcmp.gt.f32.partialorder %v696_v19, 0.0  ;;  %v767_v23 = vmul.f32 %v1551_v60, %v696_v19 }
 0x116   :  { %v1222_v24 = vpop.f32.mrb[17].mxu0  ;;  %v1270_v25 = vpop.f32.mrb[17].mxu1  ;;  %v782_v30 = vsel %vm711_vm12, %v679_v12, %v750_v16  ;;  %v798_v31 = vsel %vm727_vm13, %v695_v13, %v766_v17 }
 0x117   :  { %v1223_v26 = vadd.f32 %v1222_v24, %v1221_v20  ;;  %v1271_v27 = vadd.f32 %v1270_v25, %v1269_v21  ;;  %v1224_v28 = vpop.f32.mrb[18].mxu0  ;;  %v1272_v29 = vpop.f32.mrb[18].mxu1  ;;  %v783_v32 = vsel %vm712_vm14, %v680_v18, %v751_v22  ;;  %v799_v33 = vsel %vm728_vm15, %v696_v19, %v767_v23 }
 0x118   :  { %v1225_v34 = vpop.f32.mrb[19].mxu0  ;;  %v1273_v35 = vpop.f32.mrb[19].mxu1  ;;  %v1104_v36 = vpack.c.bf16 %v783_v32, %v782_v30  ;;  %v1144_v37 = vpack.c.bf16 %v799_v33, %v798_v31 }
 0x119   :  { %v681_v38 = vadd.f32 %v1223_v26, %v1545_v51  ;;  %v697_v39 = vadd.f32 %v1271_v27, %v1545_v51  ;;  %v1226_v40 = vadd.f32 %v1225_v34, %v1224_v28  ;;  %v1274_v41 = vadd.f32 %v1273_v35, %v1272_v29 }
 0x11a   :  { %1168 = vst [vmem:[%s1668_s4 + $0x18] sm:$0xff] %v1104_v36   ;;  %1176 = vst [vmem:[%s1668_s4 + $0x58] sm:$0xff] %v1144_v37  }
 0x11b   :  { %v752_v42 = vmul.f32 %v1551_v60, %v681_v38  ;;  %v768_v43 = vmul.f32 %v1551_v60, %v697_v39  ;;  %v682_v44 = vadd.f32 %v1226_v40, %v1545_v51  ;;  %v698_v45 = vadd.f32 %v1274_v41, %v1545_v51 }
 0x11c   :  { %vm713_vm0 = vcmp.gt.f32.partialorder %v681_v38, 0.0  ;;  %vm729_vm1 = vcmp.gt.f32.partialorder %v697_v39, 0.0 }
 0x11d   :  { %v1227_v46 = vpop.f32.mrb[20].mxu0  ;;  %v1275_v47 = vpop.f32.mrb[20].mxu1  ;;  %vm714_vm2 = vcmp.gt.f32.partialorder %v682_v44, 0.0  ;;  %v753_v48 = vmul.f32 %v1551_v60, %v682_v44  ;;  %vm730_vm3 = vcmp.gt.f32.partialorder %v698_v45, 0.0  ;;  %v769_v49 = vmul.f32 %v1551_v60, %v698_v45 }
 0x11e   :  { %v1228_v50 = vpop.f32.mrb[21].mxu0  ;;  %v1276_v52 = vpop.f32.mrb[21].mxu1  ;;  %v784_v57 = vsel %vm713_vm0, %v681_v38, %v752_v42  ;;  %v800_v58 = vsel %vm729_vm1, %v697_v39, %v768_v43 }
 0x11f   :  { %v1229_v53 = vadd.f32 %v1228_v50, %v1227_v46  ;;  %v1277_v54 = vadd.f32 %v1276_v52, %v1275_v47  ;;  %v1230_v55 = vpop.f32.mrb[22].mxu0  ;;  %v1278_v56 = vpop.f32.mrb[22].mxu1  ;;  %v785_v59 = vsel %vm714_vm2, %v682_v44, %v753_v48  ;;  %v801_v61 = vsel %vm730_vm3, %v698_v45, %v769_v49 }
 0x120   :  { %v1231_v62 = vpop.f32.mrb[23].mxu0  ;;  %v1279_v63 = vpop.f32.mrb[23].mxu1  ;;  %v1109_v0 = vpack.c.bf16 %v785_v59, %v784_v57  ;;  %v1149_v1 = vpack.c.bf16 %v801_v61, %v800_v58 }
 0x121   :  { %v683_v2 = vadd.f32 %v1229_v53, %v1545_v51  ;;  %v699_v3 = vadd.f32 %v1277_v54, %v1545_v51  ;;  %v1232_v4 = vadd.f32 %v1231_v62, %v1230_v55  ;;  %v1280_v5 = vadd.f32 %v1279_v63, %v1278_v56 }
 0x122   :  { %1169 = vst [vmem:[%s1668_s4 + $0x20] sm:$0xff] %v1109_v0   ;;  %1177 = vst [vmem:[%s1668_s4 + $0x60] sm:$0xff] %v1149_v1  }
 0x123   :  { %v754_v6 = vmul.f32 %v1551_v60, %v683_v2  ;;  %v770_v7 = vmul.f32 %v1551_v60, %v699_v3  ;;  %v684_v8 = vadd.f32 %v1232_v4, %v1545_v51  ;;  %v700_v9 = vadd.f32 %v1280_v5, %v1545_v51 }
 0x124   :  { %vm715_vm4 = vcmp.gt.f32.partialorder %v683_v2, 0.0  ;;  %vm731_vm5 = vcmp.gt.f32.partialorder %v699_v3, 0.0 }
 0x125   :  { %v1233_v10 = vpop.f32.mrb[24].mxu0  ;;  %v1281_v11 = vpop.f32.mrb[24].mxu1  ;;  %vm716_vm6 = vcmp.gt.f32.partialorder %v684_v8, 0.0  ;;  %v755_v12 = vmul.f32 %v1551_v60, %v684_v8  ;;  %vm732_vm7 = vcmp.gt.f32.partialorder %v700_v9, 0.0  ;;  %v771_v13 = vmul.f32 %v1551_v60, %v700_v9 }
 0x126   :  { %v1234_v14 = vpop.f32.mrb[25].mxu0  ;;  %v1282_v15 = vpop.f32.mrb[25].mxu1  ;;  %v786_v20 = vsel %vm715_vm4, %v683_v2, %v754_v6  ;;  %v802_v21 = vsel %vm731_vm5, %v699_v3, %v770_v7 }
 0x127   :  { %v1235_v16 = vadd.f32 %v1234_v14, %v1233_v10  ;;  %v1283_v17 = vadd.f32 %v1282_v15, %v1281_v11  ;;  %v1236_v18 = vpop.f32.mrb[26].mxu0  ;;  %v1284_v19 = vpop.f32.mrb[26].mxu1  ;;  %v787_v22 = vsel %vm716_vm6, %v684_v8, %v755_v12  ;;  %v803_v23 = vsel %vm732_vm7, %v700_v9, %v771_v13 }
 0x128   :  { %v1237_v24 = vpop.f32.mrb[27].mxu0  ;;  %v1285_v25 = vpop.f32.mrb[27].mxu1  ;;  %v1114_v26 = vpack.c.bf16 %v787_v22, %v786_v20  ;;  %v1154_v27 = vpack.c.bf16 %v803_v23, %v802_v21 }
 0x129   :  { %v685_v28 = vadd.f32 %v1235_v16, %v1545_v51  ;;  %v701_v29 = vadd.f32 %v1283_v17, %v1545_v51  ;;  %v1238_v30 = vadd.f32 %v1237_v24, %v1236_v18  ;;  %v1286_v31 = vadd.f32 %v1285_v25, %v1284_v19 }
 0x12a   :  { %1170 = vst [vmem:[%s1668_s4 + $0x28] sm:$0xff] %v1114_v26   ;;  %1178 = vst [vmem:[%s1668_s4 + $0x68] sm:$0xff] %v1154_v27  }
 0x12b   :  { %v756_v32 = vmul.f32 %v1551_v60, %v685_v28  ;;  %v772_v33 = vmul.f32 %v1551_v60, %v701_v29  ;;  %v686_v34 = vadd.f32 %v1238_v30, %v1545_v51  ;;  %v702_v35 = vadd.f32 %v1286_v31, %v1545_v51 }
 0x12c   :  { %vm717_vm8 = vcmp.gt.f32.partialorder %v685_v28, 0.0  ;;  %vm733_vm9 = vcmp.gt.f32.partialorder %v701_v29, 0.0 }
 0x12d   :  { %v1239_v36 = vpop.f32.mrb[28].mxu0  ;;  %v1287_v37 = vpop.f32.mrb[28].mxu1  ;;  %vm718_vm10 = vcmp.gt.f32.partialorder %v686_v34, 0.0  ;;  %v757_v38 = vmul.f32 %v1551_v60, %v686_v34  ;;  %vm734_vm11 = vcmp.gt.f32.partialorder %v702_v35, 0.0  ;;  %v773_v39 = vmul.f32 %v1551_v60, %v702_v35 }
 0x12e   :  { %v1240_v40 = vpop.f32.mrb[29].mxu0  ;;  %v1288_v41 = vpop.f32.mrb[29].mxu1  ;;  %v788_v46 = vsel %vm717_vm8, %v685_v28, %v756_v32  ;;  %v804_v47 = vsel %vm733_vm9, %v701_v29, %v772_v33 }
 0x12f   :  { %v1241_v42 = vadd.f32 %v1240_v40, %v1239_v36  ;;  %v1289_v43 = vadd.f32 %v1288_v41, %v1287_v37  ;;  %v1242_v44 = vpop.f32.mrb[30].mxu0  ;;  %v1290_v45 = vpop.f32.mrb[30].mxu1  ;;  %v789_v48 = vsel %vm718_vm10, %v686_v34, %v757_v38  ;;  %v805_v49 = vsel %vm734_vm11, %v702_v35, %v773_v39 }
 0x130   :  { %v1243_v50 = vpop.f32.mrb[31].mxu0  ;;  %v1291_v52 = vpop.f32.mrb[31].mxu1  ;;  %v1119_v53 = vpack.c.bf16 %v789_v48, %v788_v46  ;;  %v1159_v54 = vpack.c.bf16 %v805_v49, %v804_v47 }
 0x131   :  { %v687_v55 = vadd.f32 %v1241_v42, %v1545_v51  ;;  %v703_v56 = vadd.f32 %v1289_v43, %v1545_v51  ;;  %v1244_v57 = vadd.f32 %v1243_v50, %v1242_v44  ;;  %v1292_v58 = vadd.f32 %v1291_v52, %v1290_v45 }
 0x132   :  { %1171 = vst [vmem:[%s1668_s4 + $0x30] sm:$0xff] %v1119_v53   ;;  %1179 = vst [vmem:[%s1668_s4 + $0x70] sm:$0xff] %v1159_v54  }
 0x133   :  { %v758_v59 = vmul.f32 %v1551_v60, %v687_v55  ;;  %v774_v61 = vmul.f32 %v1551_v60, %v703_v56  ;;  %v688_v62 = vadd.f32 %v1244_v57, %v1545_v51  ;;  %v704_v63 = vadd.f32 %v1292_v58, %v1545_v51 }
 0x134   :  { %vm719_vm12 = vcmp.gt.f32.partialorder %v687_v55, 0.0  ;;  %vm735_vm13 = vcmp.gt.f32.partialorder %v703_v56, 0.0 }
 0x135   :  { %vm720_vm14 = vcmp.gt.f32.partialorder %v688_v62, 0.0  ;;  %v759_v0 = vmul.f32 %v1551_v60, %v688_v62  ;;  %vm736_vm15 = vcmp.gt.f32.partialorder %v704_v63, 0.0  ;;  %v775_v1 = vmul.f32 %v1551_v60, %v704_v63 }
 0x136   :  { %v790_v2 = vsel %vm719_vm12, %v687_v55, %v758_v59  ;;  %v806_v3 = vsel %vm735_vm13, %v703_v56, %v774_v61 }
 0x137   :  { %v791_v4 = vsel %vm720_vm14, %v688_v62, %v759_v0  ;;  %v807_v5 = vsel %vm736_vm15, %v704_v63, %v775_v1 }
 0x138   :  { %v1124_v6 = vpack.c.bf16 %v791_v4, %v790_v2  ;;  %v1164_v7 = vpack.c.bf16 %v807_v5, %v806_v3 }
 0x13a   :  { %1172 = vst [vmem:[%s1668_s4 + $0x38] sm:$0xff] %v1124_v6   ;;  %1180 = vst [vmem:[%s1668_s4 + $0x78] sm:$0xff] %v1164_v7  }

</bundles_post_ra>
